<compile_context>
chip_gen: v7x
topology: tpu7x:2x2x1
jax: 0.10.0
libtpu: 0.0.40
codegen_flags: <defaults>
</compile_context>

<pallas_src>
import functools

import jax
import jax.numpy as jnp
from jax import lax
from jax.experimental import pallas as pl
from jax.experimental.pallas import tpu as pltpu


def duc_kernel(x_ref, w_ref, b_ref, o_ref, *, wp, nb):
    # x_ref: (nb, Cin_p, Hp*Wp)  padded images, channels on sublanes
    # w_ref: (Cout, 9*Cin_p)     3x3 weights with BN scale pre-folded
    # b_ref: (Cout, 1)           conv bias + BN shift folded
    # o_ref: (nb, Cout, H*Wp)    lane-dense output (spatial on lanes)
    cin_p = x_ref.shape[1]
    cout = w_ref.shape[0]
    l_out = o_ref.shape[2]

    for n in range(nb):  # static unroll over images in this step
        acc = jnp.zeros((cout, l_out), jnp.float32)
        for t in range(9):  # static unroll over 3x3 taps
            dy, dx = t // 3, t % 3
            s = dy * wp + dx
            # Accumulating MXU dot; lane-unaligned slice lowers to XLU rotates
            # which ride a free slot (not the bottleneck).
            acc = acc + jnp.dot(
                w_ref[:, t * cin_p:(t + 1) * cin_p],
                x_ref[n, :, s:s + l_out],
                preferred_element_type=jnp.float32)
        y = jnp.maximum(acc + b_ref[...], 0.0)
        o_ref[n, :, :] = y.astype(o_ref.dtype)


def _pick_images_per_step(n):
    """Amortize per-step overhead but keep >=2 grid steps (v7x has 2 TCs)."""
    if n <= 2:
        return 1
    for nb in range(n // 2, 0, -1):
        if n % nb == 0:
            return nb
    return 1


def duc_forward(x_nchw, conv_w, conv_b, gamma, beta, run_mean, run_var,
                eps=1e-5, upscale=2, compute_dtype=jnp.float32,
                images_per_step=None):
    N, Cin, H, W = x_nchw.shape
    Cout = conv_w.shape[0]
    r = upscale
    Cs = Cout // (r * r)

    Wp = W + 2                      # 1 left + 1 right zero pad column
    Hp = H + 3                      # 1 top + 2 bottom zero pad rows (slack)
    Cin_p = ((Cin + 7) // 8) * 8    # sublane-align channels
    l_out = H * Wp

    # Flat-slice trick safety: the furthest tap slice must stay in-bounds.
    assert 2 * Wp + 2 + H * Wp <= Hp * Wp, "padded image too small for taps"

    nb = images_per_step if images_per_step is not None else _pick_images_per_step(N)
    assert N % nb == 0, "images_per_step must divide the batch size"
    gsteps = N // nb

    # --- fold BN (eval mode) + conv bias: scale into weights, shift into bias.
    scale = gamma / jnp.sqrt(run_var + eps)                    # (Cout,)
    bias = beta + (conv_b - run_mean) * scale                  # (Cout,)

    # Weights -> (Cout, 9*Cin_p); K ordered (dy, dx, cin) to match the kernel.
    w = jnp.transpose(conv_w, (0, 2, 3, 1))                    # (Cout,3,3,Cin)
    w = jnp.pad(w, ((0, 0), (0, 0), (0, 0), (0, Cin_p - Cin)))
    w = (w.reshape(Cout, 9 * Cin_p) * scale[:, None]).astype(compute_dtype)
    b_col = bias[:, None].astype(jnp.float32)                  # (Cout, 1)

    # --- ONE zero-padded copy of the input (no im2col blow-up in HBM).
    xp = jnp.pad(x_nchw, ((0, 0), (0, Cin_p - Cin), (1, 2), (1, 1)))
    xf = xp.reshape(N, Cin_p, Hp * Wp).astype(compute_dtype)   # (N,Cin_p,Hp*Wp)

    itemsize = jnp.dtype(compute_dtype).itemsize
    out_itemsize = jnp.dtype(x_nchw.dtype).itemsize

    cost = pl.CostEstimate(
        flops=2 * N * H * W * 9 * Cin * Cout,
        transcendentals=0,
        bytes_accessed=(N * Cin_p * Hp * Wp * itemsize
                        + Cout * 9 * Cin_p * itemsize
                        + N * Cout * l_out * out_itemsize),
    )

    # Size-derived VMEM budget: double-buffered in/out blocks + weights/bias,
    # plus headroom; capped below v7x's 64 MiB physical VMEM.
    in_block = nb * Cin_p * Hp * Wp * itemsize
    out_block = nb * Cout * l_out * out_itemsize
    w_bytes = Cout * 9 * Cin_p * itemsize + Cout * 4
    vmem_limit = 2 * (in_block + out_block + w_bytes) + (4 << 20)
    vmem_limit = int(min(max(vmem_limit, 4 << 20), 56 << 20))

    out = pl.pallas_call(
        functools.partial(duc_kernel, wp=Wp, nb=nb),
        out_shape=jax.ShapeDtypeStruct((N, Cout, l_out), x_nchw.dtype),
        grid_spec=pltpu.PrefetchScalarGridSpec(
            num_scalar_prefetch=0,
            grid=(gsteps,),
            in_specs=[
                pl.BlockSpec((nb, Cin_p, Hp * Wp), lambda i: (i, 0, 0)),
                pl.BlockSpec((Cout, 9 * Cin_p), lambda i: (0, 0)),
                pl.BlockSpec((Cout, 1), lambda i: (0, 0)),
            ],
            out_specs=pl.BlockSpec((nb, Cout, l_out), lambda i: (i, 0, 0)),
        ),
        compiler_params=pltpu.CompilerParams(
            dimension_semantics=("parallel",),
            vmem_limit_bytes=vmem_limit),
        cost_estimate=cost,
    )(xf, w, b_col)                                            # (N, Cout, H*Wp)

    # Drop the 2 garbage columns per padded row; result is already NCHW.
    y = out.reshape(N, Cout, H, Wp)[:, :, :, :W]               # (N,Cout,H,W)
    # torch.nn.PixelShuffle(r): pure reshape/transpose glue.
    y = y.reshape(N, Cs, r, r, H, W)
    y = jnp.transpose(y, (0, 1, 4, 2, 5, 3))
    return y.reshape(N, Cs, H * r, W * r)


def duc_reference(x_nchw, conv_w, conv_b, gamma, beta, run_mean, run_var,
                  eps=1e-5, upscale=2):
    """Pure-JAX (lax.conv) reference of the same eval-mode semantics."""
    N, Cin, H, W = x_nchw.shape
    Cout = conv_w.shape[0]
    r = upscale
    Cs = Cout // (r * r)
    y = lax.conv_general_dilated(
        x_nchw, conv_w, window_strides=(1, 1), padding=((1, 1), (1, 1)),
        dimension_numbers=("NCHW", "OIHW", "NCHW"))
    y = y + conv_b[None, :, None, None]
    y = (y - run_mean[None, :, None, None]) / jnp.sqrt(
        run_var[None, :, None, None] + eps)
    y = y * gamma[None, :, None, None] + beta[None, :, None, None]
    y = jnp.maximum(y, 0.0)
    # torch.nn.PixelShuffle
    y = y.reshape(N, Cs, r, r, H, W)
    y = jnp.transpose(y, (0, 1, 4, 2, 5, 3))
    return y.reshape(N, Cs, H * r, W * r)


if __name__ == "__main__":
    # Small, deterministic config consistent with DUC(in_channels=4,
    # out_channels=16, upscale_factor=2).
    N, Cin, H, W = 2, 4, 16, 16
    Cout, r = 16, 2

    key = jax.random.PRNGKey(0)
    k = jax.random.split(key, 7)
    x = jax.random.normal(k[0], (N, Cin, H, W), jnp.float32)
    conv_w = 0.1 * jax.random.normal(k[1], (Cout, Cin, 3, 3), jnp.float32)
    conv_b = 0.1 * jax.random.normal(k[2], (Cout,), jnp.float32)
    gamma = jax.random.uniform(k[3], (Cout,), jnp.float32, 0.5, 1.5)
    beta = 0.1 * jax.random.normal(k[4], (Cout,), jnp.float32)
    run_mean = 0.1 * jax.random.normal(k[5], (Cout,), jnp.float32)
    run_var = jax.random.uniform(k[6], (Cout,), jnp.float32, 0.5, 1.5)

    # jit the wrapper so pad/reshape/cast before the kernel and the
    # slice/transpose pixel-shuffle after it fuse into single XLA passes.
    duc_fn = jax.jit(functools.partial(duc_forward, upscale=r))
    out = duc_fn(x, conv_w, conv_b, gamma, beta, run_mean, run_var)
    out = jax.block_until_ready(out)

    ref = duc_reference(x, conv_w, conv_b, gamma, beta, run_mean, run_var,
                        upscale=r)
    assert out.shape == (N, Cout // (r * r), H * r, W * r), out.shape
    assert jnp.allclose(out, ref, atol=1e-4, rtol=1e-4), "mismatch vs reference"

    print("KERNEL_OK")
</pallas_src>

<mosaic_0001>
module attributes {stable_mosaic.version = 11 : i64} {
  func.func @duc_kernel(%arg0: i32, %arg1: memref<1x8x342xf32, #tpu.memory_space<vmem>>, %arg2: memref<16x72xf32, #tpu.memory_space<vmem>>, %arg3: memref<16x1xf32, #tpu.memory_space<vmem>>, %arg4: memref<1x16x288xf32, #tpu.memory_space<vmem>>) attributes {dimension_semantics = [#tpu.dimension_semantics<parallel>], iteration_bounds = array<i64: 2>, scalar_prefetch = 0 : i64, scratch_operands = 0 : i64, tpu.core_type = #tpu.core_type<tc>, window_params = [{transform_indices = @transform_0, window_bounds = array<i64: 1, 8, 342>}, {pipeline_mode = #tpu.pipeline_mode<synchronous>, transform_indices = @transform_1, window_bounds = array<i64: 16, 72>}, {pipeline_mode = #tpu.pipeline_mode<synchronous>, transform_indices = @transform_2, window_bounds = array<i64: 16, 1>}, {transform_indices = @transform_3, window_bounds = array<i64: 1, 16, 288>}]} {
    %cst = arith.constant 0.000000e+00 : f32
    %0 = vector.broadcast %cst : f32 to vector<16x288xf32>
    %c0 = arith.constant 0 : index
    %c0_0 = arith.constant 0 : index
    %1 = vector.load %arg2[%c0, %c0_0] : memref<16x72xf32, #tpu.memory_space<vmem>>, vector<16x8xf32>
    %c0_1 = arith.constant 0 : index
    %c0_2 = arith.constant 0 : index
    %c0_3 = arith.constant 0 : index
    %2 = vector.load %arg1[%c0_1, %c0_2, %c0_3] : memref<1x8x342xf32, #tpu.memory_space<vmem>>, vector<1x8x288xf32>
    %3 = vector.shape_cast %2 : vector<1x8x288xf32> to vector<8x288xf32>
    %cst_4 = arith.constant dense<0.000000e+00> : vector<16x288xf32>
    %4 = tpu.matmul %1, %3, %cst_4 {dimension_numbers = #tpu.dot_dimension_numbers<[1], [0], [0], [1], [0, 0, 1, 1], [], []>} : vector<16x8xf32>, vector<8x288xf32>, vector<16x288xf32> -> vector<16x288xf32>
    %5 = arith.addf %0, %4 : vector<16x288xf32>
    %c0_5 = arith.constant 0 : index
    %c8 = arith.constant 8 : index
    %6 = vector.load %arg2[%c0_5, %c8] : memref<16x72xf32, #tpu.memory_space<vmem>>, vector<16x8xf32>
    %c0_6 = arith.constant 0 : index
    %c0_7 = arith.constant 0 : index
    %c1 = arith.constant 1 : index
    %7 = vector.load %arg1[%c0_6, %c0_7, %c1] : memref<1x8x342xf32, #tpu.memory_space<vmem>>, vector<1x8x288xf32>
    %8 = vector.shape_cast %7 : vector<1x8x288xf32> to vector<8x288xf32>
    %cst_8 = arith.constant dense<0.000000e+00> : vector<16x288xf32>
    %9 = tpu.matmul %6, %8, %cst_8 {dimension_numbers = #tpu.dot_dimension_numbers<[1], [0], [0], [1], [0, 0, 1, 1], [], []>} : vector<16x8xf32>, vector<8x288xf32>, vector<16x288xf32> -> vector<16x288xf32>
    %10 = arith.addf %5, %9 : vector<16x288xf32>
    %c0_9 = arith.constant 0 : index
    %c16 = arith.constant 16 : index
    %11 = vector.load %arg2[%c0_9, %c16] : memref<16x72xf32, #tpu.memory_space<vmem>>, vector<16x8xf32>
    %c0_10 = arith.constant 0 : index
    %c0_11 = arith.constant 0 : index
    %c2 = arith.constant 2 : index
    %12 = vector.load %arg1[%c0_10, %c0_11, %c2] : memref<1x8x342xf32, #tpu.memory_space<vmem>>, vector<1x8x288xf32>
    %13 = vector.shape_cast %12 : vector<1x8x288xf32> to vector<8x288xf32>
    %cst_12 = arith.constant dense<0.000000e+00> : vector<16x288xf32>
    %14 = tpu.matmul %11, %13, %cst_12 {dimension_numbers = #tpu.dot_dimension_numbers<[1], [0], [0], [1], [0, 0, 1, 1], [], []>} : vector<16x8xf32>, vector<8x288xf32>, vector<16x288xf32> -> vector<16x288xf32>
    %15 = arith.addf %10, %14 : vector<16x288xf32>
    %c0_13 = arith.constant 0 : index
    %c24 = arith.constant 24 : index
    %16 = vector.load %arg2[%c0_13, %c24] : memref<16x72xf32, #tpu.memory_space<vmem>>, vector<16x8xf32>
    %c0_14 = arith.constant 0 : index
    %c0_15 = arith.constant 0 : index
    %c18 = arith.constant 18 : index
    %17 = vector.load %arg1[%c0_14, %c0_15, %c18] : memref<1x8x342xf32, #tpu.memory_space<vmem>>, vector<1x8x288xf32>
    %18 = vector.shape_cast %17 : vector<1x8x288xf32> to vector<8x288xf32>
    %cst_16 = arith.constant dense<0.000000e+00> : vector<16x288xf32>
    %19 = tpu.matmul %16, %18, %cst_16 {dimension_numbers = #tpu.dot_dimension_numbers<[1], [0], [0], [1], [0, 0, 1, 1], [], []>} : vector<16x8xf32>, vector<8x288xf32>, vector<16x288xf32> -> vector<16x288xf32>
    %20 = arith.addf %15, %19 : vector<16x288xf32>
    %c0_17 = arith.constant 0 : index
    %c32 = arith.constant 32 : index
    %21 = vector.load %arg2[%c0_17, %c32] : memref<16x72xf32, #tpu.memory_space<vmem>>, vector<16x8xf32>
    %c0_18 = arith.constant 0 : index
    %c0_19 = arith.constant 0 : index
    %c19 = arith.constant 19 : index
    %22 = vector.load %arg1[%c0_18, %c0_19, %c19] : memref<1x8x342xf32, #tpu.memory_space<vmem>>, vector<1x8x288xf32>
    %23 = vector.shape_cast %22 : vector<1x8x288xf32> to vector<8x288xf32>
    %cst_20 = arith.constant dense<0.000000e+00> : vector<16x288xf32>
    %24 = tpu.matmul %21, %23, %cst_20 {dimension_numbers = #tpu.dot_dimension_numbers<[1], [0], [0], [1], [0, 0, 1, 1], [], []>} : vector<16x8xf32>, vector<8x288xf32>, vector<16x288xf32> -> vector<16x288xf32>
    %25 = arith.addf %20, %24 : vector<16x288xf32>
    %c0_21 = arith.constant 0 : index
    %c40 = arith.constant 40 : index
    %26 = vector.load %arg2[%c0_21, %c40] : memref<16x72xf32, #tpu.memory_space<vmem>>, vector<16x8xf32>
    %c0_22 = arith.constant 0 : index
    %c0_23 = arith.constant 0 : index
    %c20 = arith.constant 20 : index
    %27 = vector.load %arg1[%c0_22, %c0_23, %c20] : memref<1x8x342xf32, #tpu.memory_space<vmem>>, vector<1x8x288xf32>
    %28 = vector.shape_cast %27 : vector<1x8x288xf32> to vector<8x288xf32>
    %cst_24 = arith.constant dense<0.000000e+00> : vector<16x288xf32>
    %29 = tpu.matmul %26, %28, %cst_24 {dimension_numbers = #tpu.dot_dimension_numbers<[1], [0], [0], [1], [0, 0, 1, 1], [], []>} : vector<16x8xf32>, vector<8x288xf32>, vector<16x288xf32> -> vector<16x288xf32>
    %30 = arith.addf %25, %29 : vector<16x288xf32>
    %c0_25 = arith.constant 0 : index
    %c48 = arith.constant 48 : index
    %31 = vector.load %arg2[%c0_25, %c48] : memref<16x72xf32, #tpu.memory_space<vmem>>, vector<16x8xf32>
    %c0_26 = arith.constant 0 : index
    %c0_27 = arith.constant 0 : index
    %c36 = arith.constant 36 : index
    %32 = vector.load %arg1[%c0_26, %c0_27, %c36] : memref<1x8x342xf32, #tpu.memory_space<vmem>>, vector<1x8x288xf32>
    %33 = vector.shape_cast %32 : vector<1x8x288xf32> to vector<8x288xf32>
    %cst_28 = arith.constant dense<0.000000e+00> : vector<16x288xf32>
    %34 = tpu.matmul %31, %33, %cst_28 {dimension_numbers = #tpu.dot_dimension_numbers<[1], [0], [0], [1], [0, 0, 1, 1], [], []>} : vector<16x8xf32>, vector<8x288xf32>, vector<16x288xf32> -> vector<16x288xf32>
    %35 = arith.addf %30, %34 : vector<16x288xf32>
    %c0_29 = arith.constant 0 : index
    %c56 = arith.constant 56 : index
    %36 = vector.load %arg2[%c0_29, %c56] : memref<16x72xf32, #tpu.memory_space<vmem>>, vector<16x8xf32>
    %c0_30 = arith.constant 0 : index
    %c0_31 = arith.constant 0 : index
    %c37 = arith.constant 37 : index
    %37 = vector.load %arg1[%c0_30, %c0_31, %c37] : memref<1x8x342xf32, #tpu.memory_space<vmem>>, vector<1x8x288xf32>
    %38 = vector.shape_cast %37 : vector<1x8x288xf32> to vector<8x288xf32>
    %cst_32 = arith.constant dense<0.000000e+00> : vector<16x288xf32>
    %39 = tpu.matmul %36, %38, %cst_32 {dimension_numbers = #tpu.dot_dimension_numbers<[1], [0], [0], [1], [0, 0, 1, 1], [], []>} : vector<16x8xf32>, vector<8x288xf32>, vector<16x288xf32> -> vector<16x288xf32>
    %40 = arith.addf %35, %39 : vector<16x288xf32>
    %c0_33 = arith.constant 0 : index
    %c64 = arith.constant 64 : index
    %41 = vector.load %arg2[%c0_33, %c64] : memref<16x72xf32, #tpu.memory_space<vmem>>, vector<16x8xf32>
    %c0_34 = arith.constant 0 : index
    %c0_35 = arith.constant 0 : index
    %c38 = arith.constant 38 : index
    %42 = vector.load %arg1[%c0_34, %c0_35, %c38] : memref<1x8x342xf32, #tpu.memory_space<vmem>>, vector<1x8x288xf32>
    %43 = vector.shape_cast %42 : vector<1x8x288xf32> to vector<8x288xf32>
    %cst_36 = arith.constant dense<0.000000e+00> : vector<16x288xf32>
    %44 = tpu.matmul %41, %43, %cst_36 {dimension_numbers = #tpu.dot_dimension_numbers<[1], [0], [0], [1], [0, 0, 1, 1], [], []>} : vector<16x8xf32>, vector<8x288xf32>, vector<16x288xf32> -> vector<16x288xf32>
    %45 = arith.addf %40, %44 : vector<16x288xf32>
    %c0_37 = arith.constant 0 : index
    %c0_38 = arith.constant 0 : index
    %46 = vector.load %arg3[%c0_37, %c0_38] : memref<16x1xf32, #tpu.memory_space<vmem>>, vector<16x1xf32>
    %47 = vector.broadcast %46 : vector<16x1xf32> to vector<16x288xf32>
    %48 = arith.addf %45, %47 : vector<16x288xf32>
    %cst_39 = arith.constant 0.000000e+00 : f32
    %49 = vector.broadcast %cst_39 : f32 to vector<16x288xf32>
    %50 = arith.maximumf %48, %49 : vector<16x288xf32>
    %c0_40 = arith.constant 0 : index
    %c0_41 = arith.constant 0 : index
    %c0_42 = arith.constant 0 : index
    %51 = vector.load %arg4[%c0_40, %c0_41, %c0_42] : memref<1x16x288xf32, #tpu.memory_space<vmem>>, vector<1x16x288xf32>
    %52 = vector.shape_cast %51 : vector<1x16x288xf32> to vector<16x288xf32>
    %53 = vector.shape_cast %50 : vector<16x288xf32> to vector<1x16x288xf32>
    tpu.vector_store %arg4[%c0_40, %c0_41, %c0_42], %53 {strides = array<i32>} : memref<1x16x288xf32, #tpu.memory_space<vmem>>, vector<1x16x288xf32>,
    return
  }
  func.func @transform_0(%arg0: i32) -> (i32, i32, i32) {
    %c0_i32 = arith.constant 0 : i32
    %c0_i32_0 = arith.constant 0 : i32
    %c0_i32_1 = arith.constant 0 : i32
    return %arg0, %c0_i32, %c0_i32_0 : i32, i32, i32
  }
  func.func @transform_1(%arg0: i32) -> (i32, i32) {
    %c0_i32 = arith.constant 0 : i32
    %c0_i32_0 = arith.constant 0 : i32
    %c0_i32_1 = arith.constant 0 : i32
    return %c0_i32, %c0_i32_0 : i32, i32
  }
  func.func @transform_2(%arg0: i32) -> (i32, i32) {
    %c0_i32 = arith.constant 0 : i32
    %c0_i32_0 = arith.constant 0 : i32
    %c0_i32_1 = arith.constant 0 : i32
    return %c0_i32, %c0_i32_0 : i32, i32
  }
  func.func @transform_3(%arg0: i32) -> (i32, i32, i32) {
    %c0_i32 = arith.constant 0 : i32
    %c0_i32_0 = arith.constant 0 : i32
    %c0_i32_1 = arith.constant 0 : i32
    return %arg0, %c0_i32, %c0_i32_0 : i32, i32, i32
  }
}

</mosaic_0001>

<bundles_post_ra>
// kernel: duc_forward.1
= control target key start
LH: loop header
LB: loop body
LE: loop exit
PB: predicated region body
PF: predicated region fallthrough
CT: control target
= control target key end

     0   :  { %s2083_s12 = smov 0   ;;  %s2228_s0 = inlined_call_operand.vmem [shape: f32[2,8,342], index: 0, kind: input, shape index: {}]   ;;  %s2229_s1 = inlined_call_operand.vmem [shape: f32[16,72], index: 1, kind: input, shape index: {}]   ;;  %s2230_s2 = inlined_call_operand.vmem [shape: f32[16,1], index: 2, kind: input, shape index: {}]   ;;  %s2231_s3 = inlined_call_operand.vmem [shape: f32[2,16,288], index: 3, kind: output, shape index: {}]  }
   0x1 LB: > { %s1842_s13 = sadd.s32 4294967295, %s2043_s12   ;;  %p1846_p0 = scmp.ge.s32.totalorder %s2043_s12, 1  ;;  %s2043_s12 = sphi %s2083_s12, %s13_s12  }
   0x2   : > { %p137_p1 = scmp.lt.s32.totalorder %s2043_s12, 3 }
   0x4   : > { %p138_p2 = pnand %p1846_p0, %p137_p1 }
   0x5   : > { %p161_p3 = scmp.lt.s32.totalorder (!%p138_p2), %s1842_s13, 1  ;;  %v2045_v0 = vmov (!%p138_p2), 0.0   ;;  %s2046_s18 = smov (!%p138_p2), 127   ;;  %v2110_v4 = vld [vmem:[%s2229_s1] sm:$0xff] (!%p138_p2)  ;;  %v2117_v5 = vld [vmem:[%s2229_s1 + $0x8] sm:$0xff] (!%p138_p2)  ;;  %v2061_v6 = vmov (!%p138_p2), 0  }
   0x6   : > { %141 = sbr.rel (%p138_p2) target bundleno = 434 (0x1b2), region = 32  ;;  %266 = vmatprep.mubr.f32.mxu1 (!%p138_p2), %v2045_v0  ;;  %594 = vmatprep.mubr.f32.mxu0 (!%p138_p2), %v2045_v0  ;;  %s2047_s21 = smov (!%p138_p2), 120   ;;  %v1756_v7 = vld [vmem:[%s2230_s2] sm:$0xff] (!%p138_p2)  ;;  %v1757_v8 = vld [vmem:[%s2230_s2 + $0x8] sm:$0xff] (!%p138_p2)  ;;  %vm191_vm0 = vcmask (!%p138_p2), 1039360   ;;  %vm197_vm1 = vcmask (!%p138_p2), 64512  }
   0x7   : > { %s2048_s24 = smov (!%p138_p2), 126   ;;  %s2049_s25 = smov (!%p138_p2), 112   ;;  %2035 = vset.pattern.permute.xlu0 (!%p138_p2), %v2061_v6  ;;  %2036 = vset.pattern.permute.xlu1 (!%p138_p2), %v2061_v6  ;;  %vm520_vm2 = vcmask (!%p138_p2), 1031168   ;;  %vm698_vm3 = vcmask (!%p138_p2), 900096   ;;  %vm876_vm4 = vcmask (!%p138_p2), 891904   ;;  %vm1054_vm5 = vcmask (!%p138_p2), 883712  }
   0x8   : > { %s2050_s26 = smov (!%p138_p2), 110   ;;  %s2051_s27 = smov (!%p138_p2), 104   ;;  %vm1232_vm6 = vcmask (!%p138_p2), 752640   ;;  %vm1410_vm7 = vcmask (!%p138_p2), 744448   ;;  %vm1588_vm8 = vcmask (!%p138_p2), 736256   ;;  %vm1782_vm9 = vcmask (!%p138_p2), 261120  }
   0x9   : > { %s2052_s28 = smov (!%p138_p2), 109   ;;  %s2053_s29 = smov (!%p138_p2), 96  }
   0xa   : > { %s2054_s30 = smov (!%p138_p2), 108   ;;  %s2055_s4 = smov (!%p138_p2), 88  }
   0xb   : > { %s2056_s5 = smov (!%p138_p2), 92   ;;  %s2057_s6 = smov (!%p138_p2), 80  }
   0xc   : > { %s2058_s7 = smov (!%p138_p2), 91   ;;  %s2059_s8 = smov (!%p138_p2), 72  }
   0xd   : > { %s2233_s13 = smov (!%p161_p3, %s1842_s13), 1  ;;  %s2060_s9 = smov 90  }
   0xe   : > { %s2007_s14 = smul.u32 24, %s2233_s13  ;;  %s2062_s10 = smov 64  }
  0x10   : > { %s165_s17 = scalar_lea.vmem %s2228_s0, %s2007_s14 }
  0x11   : > { %v2099_v1 = vld [vmem:[%s165_s17 + $0x8] sm:$0xff]  ;;  %v2101_v2 = vld [vmem:[%s165_s17] sm:$0xff]  ;;  %v2105_v3 = vld [vmem:[%s165_s17 + $0x10] sm:$0xff]  ;;  %s2008_s17 = smul.u32 48, %s2233_s13 }
  0x12   : > { %187 = vrot.lane.b32.xlu0 %v2099_v1, %s2046_s18  ;;  %185 = vrot.lane.b32.xlu1 %v2101_v2, %s2046_s18 }
  0x13   : > { %s170_s20 = scalar_lea.vmem %s2231_s3, %s2008_s17 }
  0x16   : > { %189 = vrot.lane.b32.xlu0 %v2105_v3, %s2046_s18  ;;  %178 = vrot.lane.b32.xlu1 %v2110_v4, %s2047_s21 }
  0x1a   : > { %180 = vrot.lane.b32.xlu0 %v2117_v5, %s2047_s21  ;;  %516 = vrot.lane.b32.xlu1 %v2099_v1, %s2048_s24 }
  0x1e   : > { %518 = vrot.lane.b32.xlu0 %v2105_v3, %s2048_s24  ;;  %514 = vrot.lane.b32.xlu1 %v2101_v2, %s2048_s24 }
  0x22   : > { %510 = vrot.lane.b32.xlu0 %v2110_v4, %s2049_s25  ;;  %512 = vrot.lane.b32.xlu1 %v2117_v5, %s2049_s25 }
  0x26   : > { %694 = vrot.lane.b32.xlu0 %v2099_v1, %s2050_s26  ;;  %696 = vrot.lane.b32.xlu1 %v2105_v3, %s2050_s26 }
  0x2a   : > { %692 = vrot.lane.b32.xlu0 %v2101_v2, %s2050_s26  ;;  %688 = vrot.lane.b32.xlu1 %v2110_v4, %s2051_s27 }
  0x2e   : > { %690 = vrot.lane.b32.xlu0 %v2117_v5, %s2051_s27  ;;  %872 = vrot.lane.b32.xlu1 %v2099_v1, %s2052_s28 }
  0x32   : > { %874 = vrot.lane.b32.xlu0 %v2105_v3, %s2052_s28  ;;  %870 = vrot.lane.b32.xlu1 %v2101_v2, %s2052_s28 }
  0x36   : > { %866 = vrot.lane.b32.xlu0 %v2110_v4, %s2053_s29  ;;  %868 = vrot.lane.b32.xlu1 %v2117_v5, %s2053_s29 }
  0x3a   : > { %1050 = vrot.lane.b32.xlu0 %v2099_v1, %s2054_s30  ;;  %1052 = vrot.lane.b32.xlu1 %v2105_v3, %s2054_s30 }
  0x3e   : > { %1048 = vrot.lane.b32.xlu0 %v2101_v2, %s2054_s30  ;;  %1044 = vrot.lane.b32.xlu1 %v2110_v4, %s2055_s4 }
  0x42   : > { %1046 = vrot.lane.b32.xlu0 %v2117_v5, %s2055_s4  ;;  %1228 = vrot.lane.b32.xlu1 %v2099_v1, %s2056_s5 }
  0x46   : > { %1230 = vrot.lane.b32.xlu0 %v2105_v3, %s2056_s5  ;;  %1226 = vrot.lane.b32.xlu1 %v2101_v2, %s2056_s5 }
  0x4a   : > { %1222 = vrot.lane.b32.xlu0 %v2110_v4, %s2057_s6  ;;  %1224 = vrot.lane.b32.xlu1 %v2117_v5, %s2057_s6 }
  0x4e   : > { %1406 = vrot.lane.b32.xlu0 %v2099_v1, %s2058_s7  ;;  %1408 = vrot.lane.b32.xlu1 %v2105_v3, %s2058_s7 }
  0x52   : > { %1404 = vrot.lane.b32.xlu0 %v2101_v2, %s2058_s7  ;;  %1400 = vrot.lane.b32.xlu1 %v2110_v4, %s2059_s8 }
  0x56   : > { %1402 = vrot.lane.b32.xlu0 %v2117_v5, %s2059_s8  ;;  %1584 = vrot.lane.b32.xlu1 %v2099_v1, %s2060_s9 }
  0x5a   : > { %1586 = vrot.lane.b32.xlu0 %v2105_v3, %s2060_s9  ;;  %1582 = vrot.lane.b32.xlu1 %v2101_v2, %s2060_s9 }
  0x5e   : > { %1578 = vrot.lane.b32.xlu0 %v2110_v4, %s2062_s10  ;;  %1580 = vrot.lane.b32.xlu1 %v2117_v5, %s2062_s10 }
  0x62   : > { %1760 = vperm.xlu0 %2035, %v1756_v7   ;;  %1765 = vperm.xlu1 %2036, %v1757_v8  }
  0x84   : > { %v188_v9 = vpop.permute.xlu0 %187  ;;  %v186_v10 = vpop.permute.xlu1 %185 }
  0x85   : > { %v192_v14 = vsel %vm191_vm0, %v186_v10, %v188_v9 }
  0x88   : > { %v190_v11 = vpop.permute.xlu0 %189  ;;  %v179_v12 = vpop.permute.xlu1 %178 }
  0x89   : > { %v193_v13 = vsel %vm191_vm0, %v188_v9, %v190_v11 }
  0x8a   : > { %202 = vmatprep.subr.mxu1 %v193_v13 }
  0x8b   : > { %203 = vmatpush1.msra.mxu1 %v192_v14 }
  0x8c   : > { %v181_v15 = vpop.permute.xlu0 %180  ;;  %1849 = vmatmul.mubr.msk.f32.vlgmr.msra.gmra.mrb[0].mxu1 %vm197_vm1, %v179_v12  ;;  %1914 = vmatprep.subr.mxu1 %v190_v11  ;;  %v517_v16 = vpop.permute.xlu1 %516 }
  0x8d   : > { %1915 = vmatpush3.msra.mxu1 %v190_v11  ;;  %272 = vmatprep.mubr.f32.mxu1 %v2045_v0 }
  0x8e   : > { %358 = vmatprep.subr.mxu1 %v2099_v1 }
  0x90   : > { %v519_v17 = vpop.permute.xlu0 %518  ;;  %1850 = vmatmul.mubr.msk.f32.gmra.mrb[2].mxu1 %vm197_vm1, %v181_v15  ;;  %v515_v18 = vpop.permute.xlu1 %514 }
  0x91   : > { %1916 = vmatprep.mubr.msk.f32.mxu1 %vm197_vm1, %v179_v12  ;;  %v522_v19 = vsel %vm520_vm2, %v517_v16, %v519_v17  ;;  %v521_v20 = vsel %vm520_vm2, %v515_v18, %v517_v16 }
  0x92   : > { %530 = vmatprep.subr.mxu0 %v522_v19 }
  0x93   : > { %531 = vmatpush1.msra.mxu0 %v521_v20 }
  0x94   : > { %v511_v21 = vpop.permute.xlu0 %510  ;;  %1917 = vmatmul.mubr.msk.f32.vlgmr.msra.gmra.mrb[4].mxu1 %vm197_vm1, %v181_v15  ;;  %v513_v22 = vpop.permute.xlu1 %512 }
  0x95   : > { %1857 = vmatmul.mubr.msk.f32.vlgmr.msra.gmra.mrb[0].mxu0 %vm197_vm1, %v511_v21  ;;  %359 = vmatpush1.msra.mxu1 %v2101_v2 }
  0x96   : > { %422 = vmatprep.mubr.f32.mxu1 %v2045_v0  ;;  %1919 = vmatprep.subr.mxu1 %v2105_v3 }
  0x97   : > { %600 = vmatprep.mubr.f32.mxu0 %v2045_v0 }
  0x98   : > { %v695_v23 = vpop.permute.xlu0 %694  ;;  %1853 = vmatmul.mubr.msk.f32.vlgmr.msra.gmra.mrb[0].mxu1 %vm197_vm1, %v2110_v4  ;;  %v697_v24 = vpop.permute.xlu1 %696 }
  0x99   : > { %1920 = vmatpush3.msra.mxu1 %v2105_v3  ;;  %1858 = vmatmul.mubr.msk.f32.gmra.mrb[2].mxu0 %vm197_vm1, %v513_v22  ;;  %v700_v25 = vsel %vm698_vm3, %v695_v23, %v697_v24 }
  0x9a   : > { %1924 = vmatprep.subr.mxu1 %v519_v17  ;;  %708 = vmatprep.subr.mxu0 %v700_v25 }
  0x9b   : > { %428 = vmatprep.mubr.f32.mxu1 %v2045_v0  ;;  %772 = vmatprep.mubr.f32.mxu0 %v2045_v0 }
  0x9c   : > { %v693_v26 = vpop.permute.xlu0 %692  ;;  %1854 = vmatmul.mubr.msk.f32.gmra.mrb[2].mxu1 %vm197_vm1, %v2117_v5  ;;  %v689_v27 = vpop.permute.xlu1 %688 }
  0x9d   : > { %v699_v28 = vsel %vm698_vm3, %v693_v26, %v695_v23  ;;  %1921 = vmatprep.mubr.msk.f32.mxu1 %vm197_vm1, %v2110_v4 }
  0x9e   : > { %709 = vmatpush1.msra.mxu0 %v699_v28 }
  0x9f   : > { %1861 = vmatmul.mubr.msk.f32.vlgmr.msra.gmra.mrb[0].mxu0 %vm197_vm1, %v689_v27 }
  0xa0   : > { %v691_v29 = vpop.permute.xlu0 %690  ;;  %1922 = vmatmul.mubr.msk.f32.vlgmr.msra.gmra.mrb[4].mxu1 %vm197_vm1, %v2117_v5  ;;  %v873_v30 = vpop.permute.xlu1 %872  ;;  %778 = vmatprep.mubr.f32.mxu0 %v2045_v0 }
  0xa1   : > { %1925 = vmatpush3.msra.mxu1 %v519_v17  ;;  %1926 = vmatprep.mubr.msk.f32.mxu1 %vm197_vm1, %v511_v21 }
  0xa2   : > { %1929 = vmatprep.subr.mxu1 %v697_v24 }
  0xa3   : > { %1862 = vmatmul.mubr.msk.f32.gmra.mrb[2].mxu0 %vm197_vm1, %v691_v29 }
  0xa4   : > { %v875_v31 = vpop.permute.xlu0 %874  ;;  %v871_v32 = vpop.permute.xlu1 %870  ;;  %950 = vmatprep.mubr.f32.mxu0 %v2045_v0 }
  0xa5   : > { %v877_v33 = vsel %vm876_vm4, %v871_v32, %v873_v30  ;;  %v878_v34 = vsel %vm876_vm4, %v873_v30, %v875_v31 }
  0xa6   : > { %886 = vmatprep.subr.mxu0 %v878_v34 }
  0xa7   : > { %887 = vmatpush1.msra.mxu0 %v877_v33 }
  0xa8   : > { %v867_v35 = vpop.permute.xlu0 %866  ;;  %1927 = vmatmul.mubr.msk.f32.vlgmr.msra.gmra.mrb[4].mxu1 %vm197_vm1, %v513_v22  ;;  %v869_v36 = vpop.permute.xlu1 %868 }
  0xa9   : > { %1930 = vmatpush3.msra.mxu1 %v697_v24  ;;  %1931 = vmatprep.mubr.msk.f32.mxu1 %vm197_vm1, %v689_v27 }
  0xaa   : > { %1865 = vmatmul.mubr.msk.f32.vlgmr.msra.gmra.mrb[0].mxu0 %vm197_vm1, %v867_v35  ;;  %1934 = vmatprep.subr.mxu1 %v875_v31 }
  0xab   : > { %956 = vmatprep.mubr.f32.mxu0 %v2045_v0 }
  0xac   : > { %v1051_v37 = vpop.permute.xlu0 %1050  ;;  %v1053_v38 = vpop.permute.xlu1 %1052 }
  0xad   : > { %v1056_v39 = vsel %vm1054_vm5, %v1051_v37, %v1053_v38 }
  0xae   : > { %1866 = vmatmul.mubr.msk.f32.gmra.mrb[2].mxu0 %vm197_vm1, %v869_v36  ;;  %1064 = vmatprep.subr.mxu0 %v1056_v39 }
  0xaf   : > { %1128 = vmatprep.mubr.f32.mxu0 %v2045_v0 }
  0xb0   : > { %v1049_v40 = vpop.permute.xlu0 %1048  ;;  %1932 = vmatmul.mubr.msk.f32.vlgmr.msra.gmra.mrb[4].mxu1 %vm197_vm1, %v691_v29  ;;  %v1045_v41 = vpop.permute.xlu1 %1044 }
  0xb1   : > { %v1055_v42 = vsel %vm1054_vm5, %v1049_v40, %v1051_v37  ;;  %1935 = vmatpush3.msra.mxu1 %v875_v31  ;;  %1936 = vmatprep.mubr.msk.f32.mxu1 %vm197_vm1, %v867_v35 }
  0xb2   : > { %1939 = vmatprep.subr.mxu1 %v1053_v38  ;;  %1065 = vmatpush1.msra.mxu0 %v1055_v42 }
  0xb3   : > { %1869 = vmatmul.mubr.msk.f32.vlgmr.msra.gmra.mrb[0].mxu0 %vm197_vm1, %v1045_v41 }
  0xb4   : > { %v1047_v43 = vpop.permute.xlu0 %1046  ;;  %v1229_v44 = vpop.permute.xlu1 %1228  ;;  %1134 = vmatprep.mubr.f32.mxu0 %v2045_v0 }
  0xb7   : > { %1870 = vmatmul.mubr.msk.f32.gmra.mrb[2].mxu0 %vm197_vm1, %v1047_v43 }
  0xb8   : > { %v1231_v45 = vpop.permute.xlu0 %1230  ;;  %1937 = vmatmul.mubr.msk.f32.vlgmr.msra.gmra.mrb[4].mxu1 %vm197_vm1, %v869_v36  ;;  %v1227_v46 = vpop.permute.xlu1 %1226  ;;  %1306 = vmatprep.mubr.f32.mxu0 %v2045_v0 }
  0xb9   : > { %1940 = vmatpush3.msra.mxu1 %v1053_v38  ;;  %v1233_v47 = vsel %vm1232_vm6, %v1227_v46, %v1229_v44  ;;  %1941 = vmatprep.mubr.msk.f32.mxu1 %vm197_vm1, %v1045_v41  ;;  %v1234_v48 = vsel %vm1232_vm6, %v1229_v44, %v1231_v45 }
  0xba   : > { %1944 = vmatprep.subr.mxu1 %v1231_v45  ;;  %1242 = vmatprep.subr.mxu0 %v1234_v48 }
  0xbb   : > { %1243 = vmatpush1.msra.mxu0 %v1233_v47 }
  0xbc   : > { %v1223_v49 = vpop.permute.xlu0 %1222  ;;  %v1225_v50 = vpop.permute.xlu1 %1224 }
  0xbd   : > { %1873 = vmatmul.mubr.msk.f32.vlgmr.msra.gmra.mrb[0].mxu0 %vm197_vm1, %v1223_v49 }
  0xbe   : > { %1312 = vmatprep.mubr.f32.mxu0 %v2045_v0 }
  0xc0   : > { %v1407_v51 = vpop.permute.xlu0 %1406  ;;  %1942 = vmatmul.mubr.msk.f32.vlgmr.msra.gmra.mrb[4].mxu1 %vm197_vm1, %v1047_v43  ;;  %v1409_v52 = vpop.permute.xlu1 %1408 }
  0xc1   : > { %1945 = vmatpush3.msra.mxu1 %v1231_v45  ;;  %1874 = vmatmul.mubr.msk.f32.gmra.mrb[2].mxu0 %vm197_vm1, %v1225_v50  ;;  %v1412_v53 = vsel %vm1410_vm7, %v1407_v51, %v1409_v52 }
  0xc2   : > { %1946 = vmatprep.mubr.msk.f32.mxu1 %vm197_vm1, %v1223_v49  ;;  %1420 = vmatprep.subr.mxu0 %v1412_v53 }
  0xc3   : > { %1949 = vmatprep.subr.mxu1 %v1409_v52  ;;  %1484 = vmatprep.mubr.f32.mxu0 %v2045_v0 }
  0xc4   : > { %v1405_v54 = vpop.permute.xlu0 %1404  ;;  %v1401_v55 = vpop.permute.xlu1 %1400 }
  0xc5   : > { %v1411_v56 = vsel %vm1410_vm7, %v1405_v54, %v1407_v51 }
  0xc6   : > { %1421 = vmatpush1.msra.mxu0 %v1411_v56 }
  0xc7   : > { %1877 = vmatmul.mubr.msk.f32.vlgmr.msra.gmra.mrb[0].mxu0 %vm197_vm1, %v1401_v55 }
  0xc8   : > { %v1403_v57 = vpop.permute.xlu0 %1402  ;;  %1947 = vmatmul.mubr.msk.f32.vlgmr.msra.gmra.mrb[4].mxu1 %vm197_vm1, %v1225_v50  ;;  %v1585_v58 = vpop.permute.xlu1 %1584  ;;  %1490 = vmatprep.mubr.f32.mxu0 %v2045_v0 }
  0xc9   : > { %1950 = vmatpush3.msra.mxu1 %v1409_v52  ;;  %1951 = vmatprep.mubr.msk.f32.mxu1 %vm197_vm1, %v1401_v55 }
  0xcb   : > { %1878 = vmatmul.mubr.msk.f32.gmra.mrb[2].mxu0 %vm197_vm1, %v1403_v57 }
  0xcc   : > { %v1587_v59 = vpop.permute.xlu0 %1586  ;;  %v1583_v60 = vpop.permute.xlu1 %1582  ;;  %1662 = vmatprep.mubr.f32.mxu0 %v2045_v0 }
  0xcd   : > { %v1589_v61 = vsel %vm1588_vm8, %v1583_v60, %v1585_v58  ;;  %1954 = vmatprep.subr.mxu1 %v1587_v59  ;;  %v1590_v62 = vsel %vm1588_vm8, %v1585_v58, %v1587_v59 }
  0xce   : > { %1598 = vmatprep.subr.mxu0 %v1590_v62 }
  0xcf   : > { %1599 = vmatpush1.msra.mxu0 %v1589_v61 }
  0xd0   : > { %v1579_v63 = vpop.permute.xlu0 %1578  ;;  %1952 = vmatmul.mubr.msk.f32.vlgmr.msra.gmra.mrb[4].mxu1 %vm197_vm1, %v1403_v57  ;;  %v1581_v1 = vpop.permute.xlu1 %1580 }
  0xd1   : > { %1955 = vmatpush3.msra.mxu1 %v1587_v59  ;;  %1881 = vmatmul.mubr.msk.f32.vlgmr.msra.gmra.mrb[0].mxu0 %vm197_vm1, %v1579_v63 }
  0xd2   : > { %1668 = vmatprep.mubr.f32.mxu0 %v2045_v0  ;;  %1956 = vmatprep.mubr.msk.f32.mxu1 %vm197_vm1, %v1579_v63 }
  0xd5   : > { %1882 = vmatmul.mubr.msk.f32.gmra.mrb[2].mxu0 %vm197_vm1, %v1581_v1 }
  0xd8   : > { %1957 = vmatmul.mubr.msk.f32.vlgmr.msra.gmra.mrb[4].mxu1 %vm197_vm1, %v1581_v1 }
  0xe1   : > { %v1761_v7 = vpop.permute.xlu0 %1760  ;;  %v1766_v13 = vpop.permute.xlu1 %1765 }
 0x16b   : > { %v424_v2 = vpop.f32.mrb[0].mxu1 }
 0x16c   : > { %v426_v3 = vpop.f32.mrb[1].mxu1 }
 0x16f   : > { %v430_v4 = vpop.f32.mrb[2].mxu1 }
 0x170   : > { %v432_v5 = vpop.f32.mrb[3].mxu1 }
 0x1a4   : > { %v1664_v6 = vpop.f32.mrb[0].mxu0 }
 0x1a5   : > { %v1959_v8 = vadd.f32 %v1664_v6, %v424_v2  ;;  %v1666_v9 = vpop.f32.mrb[1].mxu0 }
 0x1a6   : > { %v1960_v10 = vadd.f32 %v1666_v9, %v426_v3 }
 0x1a7   : > { %v1768_v11 = vadd.f32 %v1959_v8, %v1761_v7 }
 0x1a8   : > { %v1769_v0 = vadd.f32 %v1960_v10, %v1761_v7  ;;  %v1670_v12 = vpop.f32.mrb[2].mxu0 }
 0x1a9   : > { %v1774_v14 = vmax.f32 %v1768_v11, 0.0  ;;  %v1961_v15 = vadd.f32 %v1670_v12, %v430_v4  ;;  %v1672_v16 = vpop.f32.mrb[3].mxu0 }
 0x1aa   : > { %v1775_v17 = vmax.f32 %v1769_v0, 0.0  ;;  %v1962_v18 = vadd.f32 %v1672_v16, %v432_v5 }
 0x1ab   : > { %1780 = vst [vmem:[%s170_s20] sm:$0xff] %v1774_v14  ;;  %v1771_v19 = vadd.f32 %v1961_v15, %v1766_v13  ;;  %v1958_v20 = vpop.f32.mrb[4].mxu1 }
 0x1ac   : > { %1781 = vst [vmem:[%s170_s20 + $0x8] sm:$0xff] %v1775_v17  ;;  %v1772_v21 = vadd.f32 %v1962_v18, %v1766_v13  ;;  %v1773_v22 = vadd.f32 %v1958_v20, %v1766_v13  ;;  %v1741_v23 = vpop.f32.mrb[5].mxu1 }
 0x1ad   : > { %v1777_v24 = vmax.f32 %v1771_v19, 0.0  ;;  %v1770_v25 = vadd.f32 %v1761_v7, %v1741_v23 }
 0x1ae   : > { %v1778_v26 = vmax.f32 %v1772_v21, 0.0  ;;  %v1779_v27 = vmax.f32 %v1773_v22, 0.0 }
 0x1af   : > { %1784 = vst [vmem:[%s170_s20 + $0x18] sm:$0xff] %v1777_v24  ;;  %v1776_v28 = vmax.f32 %v1770_v25, 0.0 }
 0x1b0   : > { %1785 = vst [vmem:[%s170_s20 + $0x20] sm:$0xff] %v1778_v26  ;;  %1786 = vst.msk [vmem:[%s170_s20 + $0x28] sm:$0xff] %vm1782_vm9, %v1779_v27 }
 0x1b1   : > { %1783 = vst.msk [vmem:[%s170_s20 + $0x10] sm:$0xff] %vm1782_vm9, %v1776_v28 }
 0x1b2 PF: > { %s13_s12 = sadd.s32 1, %s2043_s12  }
 0x1b3   : > { %p10_p4 = scmp.ge.s32.totalorder %s13_s12, 4  }
 0x1b5   :  { %12 = sbr.rel (!%p10_p4) target bundleno = 1 (0x1), region = 62 }

</bundles_post_ra>
